<compile_context>
chip_gen: v6e
topology: v6e:2x2x1
jax: 0.10.0
libtpu: 0.0.40
codegen_flags: <defaults>
</compile_context>

<pallas_src>
import jax
import jax.numpy as jnp
from jax.experimental import pallas as pl
from jax.experimental.pallas import tpu as pltpu


def _channel_se_kernel(x_ref, w1_ref, b1_ref, w2_ref, b2_ref, o_ref):
    """Fused SE block for one batch element.

    x_ref : (1, C, HW)  input slab
    w1_ref: (Cr, C)     fc1.weight (PyTorch layout)
    b1_ref: (Cr, 1)     fc1.bias as a column
    w2_ref: (C, Cr)     fc2.weight (PyTorch layout)
    b2_ref: (C, 1)      fc2.bias as a column
    o_ref : (1, C, HW)  output slab
    """
    x = x_ref[0]                                   # (C, HW)
    hw = x.shape[-1]

    # Squeeze: global average pool over the spatial (lane) axis -> (C, 1).
    xf = x.astype(jnp.float32)
    squeeze = jnp.sum(xf, axis=-1, keepdims=True) * (1.0 / hw)

    # Excitation: fc1 -> ReLU -> fc2 -> sigmoid, all in column layout.
    h = jnp.dot(w1_ref[...], squeeze, preferred_element_type=jnp.float32)
    h = jnp.maximum(h + b1_ref[...], 0.0)          # (Cr, 1)
    z = jnp.dot(w2_ref[...], h, preferred_element_type=jnp.float32)
    gate = jax.nn.sigmoid(z + b2_ref[...])         # (C, 1)

    # Scale: channel-wise rescale (lane broadcast of the per-channel gate).
    o_ref[0] = (xf * gate).astype(o_ref.dtype)


@jax.jit
def channel_se_layer(x, fc1_w, fc1_b, fc2_w, fc2_b):
    """x: (B, C, H, W); fc1_w: (Cr, C); fc1_b: (Cr,); fc2_w: (C, Cr); fc2_b: (C,)."""
    B, C, H, W = x.shape
    HW = H * W
    Cr = fc1_w.shape[0]
    assert fc1_w.shape == (Cr, C)
    assert fc2_w.shape == (C, Cr)

    # Contiguous dim collapse: free metadata reshape, no extra HBM pass.
    x3 = x.reshape(B, C, HW)
    b1c = fc1_b.reshape(Cr, 1)
    b2c = fc2_b.reshape(C, 1)

    itemsize = jnp.dtype(x.dtype).itemsize
    block_bytes = C * HW * itemsize
    param_bytes = (2 * C * Cr + C + Cr) * itemsize
    # in + out slabs, double-buffered, plus resident params and slack.
    vmem_need = 4 * block_bytes + 2 * param_bytes + (1 << 20)

    cost = pl.CostEstimate(
        flops=2 * B * C * HW + 4 * B * C * Cr,
        transcendentals=B * C,                       # sigmoid
        bytes_accessed=2 * B * C * HW * itemsize + param_bytes,
    )

    out3 = pl.pallas_call(
        _channel_se_kernel,
        out_shape=jax.ShapeDtypeStruct((B, C, HW), x.dtype),
        grid_spec=pltpu.PrefetchScalarGridSpec(
            num_scalar_prefetch=0,
            grid=(B,),
            in_specs=[
                pl.BlockSpec((1, C, HW), lambda b: (b, 0, 0)),  # x slab per batch
                pl.BlockSpec((Cr, C), lambda b: (0, 0)),        # W1 (resident)
                pl.BlockSpec((Cr, 1), lambda b: (0, 0)),        # b1
                pl.BlockSpec((C, Cr), lambda b: (0, 0)),        # W2 (resident)
                pl.BlockSpec((C, 1), lambda b: (0, 0)),         # b2
            ],
            out_specs=pl.BlockSpec((1, C, HW), lambda b: (b, 0, 0)),
        ),
        compiler_params=pltpu.CompilerParams(
            dimension_semantics=("parallel",),
            vmem_limit_bytes=int(max(vmem_need, 32 << 20)),
        ),
        cost_estimate=cost,
    )(x3, fc1_w, b1c, fc2_w, b2c)

    return out3.reshape(B, C, H, W)


def _reference(x, fc1_w, fc1_b, fc2_w, fc2_b):
    B, C, H, W = x.shape
    s = x.reshape(B, C, -1).mean(axis=2)                       # (B, C)
    h = jnp.maximum(s @ fc1_w.T + fc1_b, 0.0)                  # ReLU(fc1)
    g = jax.nn.sigmoid(h @ fc2_w.T + fc2_b)                    # sigmoid(fc2)
    return x * g[:, :, None, None]


if __name__ == "__main__":
    key = jax.random.PRNGKey(0)
    kx, k1, k2, k3, k4 = jax.random.split(key, 5)

    # Small shapes consistent with ChannelSELayer(num_channels=4, reduction_ratio=2).
    B, C, H, W = 2, 4, 16, 16
    reduction_ratio = 2
    Cr = C // reduction_ratio

    x = jax.random.normal(kx, (B, C, H, W), dtype=jnp.float32)
    fc1_w = jax.random.normal(k1, (Cr, C), dtype=jnp.float32) * 0.5
    fc1_b = jax.random.normal(k2, (Cr,), dtype=jnp.float32) * 0.5
    fc2_w = jax.random.normal(k3, (C, Cr), dtype=jnp.float32) * 0.5
    fc2_b = jax.random.normal(k4, (C,), dtype=jnp.float32) * 0.5

    out = channel_se_layer(x, fc1_w, fc1_b, fc2_w, fc2_b)
    out = jax.block_until_ready(out)

    ref = _reference(x, fc1_w, fc1_b, fc2_w, fc2_b)
    assert out.shape == (B, C, H, W)
    assert jnp.allclose(out, ref, atol=1e-4, rtol=1e-4), "mismatch vs reference"

    print("KERNEL_OK")
</pallas_src>

<mosaic_0001>
module attributes {stable_mosaic.version = 11 : i64} {
  func.func @_channel_se_kernel(%arg0: i32, %arg1: memref<1x4x256xf32, #tpu.memory_space<vmem>>, %arg2: memref<2x4xf32, #tpu.memory_space<vmem>>, %arg3: memref<2x1xf32, #tpu.memory_space<vmem>>, %arg4: memref<4x2xf32, #tpu.memory_space<vmem>>, %arg5: memref<4x1xf32, #tpu.memory_space<vmem>>, %arg6: memref<1x4x256xf32, #tpu.memory_space<vmem>>) attributes {dimension_semantics = [#tpu.dimension_semantics<parallel>], iteration_bounds = array<i64: 2>, scalar_prefetch = 0 : i64, scratch_operands = 0 : i64, tpu.core_type = #tpu.core_type<tc>, window_params = [{transform_indices = @transform_0, window_bounds = array<i64: 1, 4, 256>}, {pipeline_mode = #tpu.pipeline_mode<synchronous>, transform_indices = @transform_1, window_bounds = array<i64: 2, 4>}, {pipeline_mode = #tpu.pipeline_mode<synchronous>, transform_indices = @transform_2, window_bounds = array<i64: 2, 1>}, {pipeline_mode = #tpu.pipeline_mode<synchronous>, transform_indices = @transform_3, window_bounds = array<i64: 4, 2>}, {pipeline_mode = #tpu.pipeline_mode<synchronous>, transform_indices = @transform_4, window_bounds = array<i64: 4, 1>}, {transform_indices = @transform_5, window_bounds = array<i64: 1, 4, 256>}]} {
    %c0 = arith.constant 0 : index
    %c0_0 = arith.constant 0 : index
    %c0_1 = arith.constant 0 : index
    %0 = vector.load %arg1[%c0, %c0_0, %c0_1] : memref<1x4x256xf32, #tpu.memory_space<vmem>>, vector<1x4x256xf32>
    %1 = vector.shape_cast %0 : vector<1x4x256xf32> to vector<4x256xf32>
    %cst = arith.constant dense<0.000000e+00> : vector<4xf32>
    %2 = vector.multi_reduction <add>, %1, %cst [1] : vector<4x256xf32> to vector<4xf32>
    %3 = vector.shape_cast %2 : vector<4xf32> to vector<4x1xf32>
    %cst_2 = arith.constant 3.906250e-03 : f32
    %4 = vector.broadcast %cst_2 : f32 to vector<4x1xf32>
    %5 = arith.mulf %3, %4 : vector<4x1xf32>
    %c0_3 = arith.constant 0 : index
    %c0_4 = arith.constant 0 : index
    %6 = vector.load %arg2[%c0_3, %c0_4] : memref<2x4xf32, #tpu.memory_space<vmem>>, vector<2x4xf32>
    %cst_5 = arith.constant dense<0.000000e+00> : vector<2x1xf32>
    %7 = tpu.matmul %6, %5, %cst_5 {dimension_numbers = #tpu.dot_dimension_numbers<[1], [0], [0], [1], [0, 0, 1, 1], [], []>} : vector<2x4xf32>, vector<4x1xf32>, vector<2x1xf32> -> vector<2x1xf32>
    %c0_6 = arith.constant 0 : index
    %c0_7 = arith.constant 0 : index
    %8 = vector.load %arg3[%c0_6, %c0_7] : memref<2x1xf32, #tpu.memory_space<vmem>>, vector<2x1xf32>
    %9 = arith.addf %7, %8 : vector<2x1xf32>
    %cst_8 = arith.constant 0.000000e+00 : f32
    %10 = vector.broadcast %cst_8 : f32 to vector<2x1xf32>
    %11 = arith.maximumf %9, %10 : vector<2x1xf32>
    %c0_9 = arith.constant 0 : index
    %c0_10 = arith.constant 0 : index
    %12 = vector.load %arg4[%c0_9, %c0_10] : memref<4x2xf32, #tpu.memory_space<vmem>>, vector<4x2xf32>
    %cst_11 = arith.constant dense<0.000000e+00> : vector<4x1xf32>
    %13 = tpu.matmul %12, %11, %cst_11 {dimension_numbers = #tpu.dot_dimension_numbers<[1], [0], [0], [1], [0, 0, 1, 1], [], []>} : vector<4x2xf32>, vector<2x1xf32>, vector<4x1xf32> -> vector<4x1xf32>
    %c0_12 = arith.constant 0 : index
    %c0_13 = arith.constant 0 : index
    %14 = vector.load %arg5[%c0_12, %c0_13] : memref<4x1xf32, #tpu.memory_space<vmem>>, vector<4x1xf32>
    %15 = arith.addf %13, %14 : vector<4x1xf32>
    %16 = arith.negf %15 : vector<4x1xf32>
    %17 = math.exp %16 : vector<4x1xf32>
    %cst_14 = arith.constant 1.000000e+00 : f32
    %18 = vector.broadcast %cst_14 : f32 to vector<4x1xf32>
    %19 = arith.addf %18, %17 : vector<4x1xf32>
    %20 = arith.divf %18, %19 : vector<4x1xf32>
    %21 = vector.broadcast %20 : vector<4x1xf32> to vector<4x256xf32>
    %22 = arith.mulf %1, %21 : vector<4x256xf32>
    %c0_15 = arith.constant 0 : index
    %c0_16 = arith.constant 0 : index
    %c0_17 = arith.constant 0 : index
    %23 = vector.load %arg6[%c0_15, %c0_16, %c0_17] : memref<1x4x256xf32, #tpu.memory_space<vmem>>, vector<1x4x256xf32>
    %24 = vector.shape_cast %23 : vector<1x4x256xf32> to vector<4x256xf32>
    %25 = vector.shape_cast %22 : vector<4x256xf32> to vector<1x4x256xf32>
    tpu.vector_store %arg6[%c0_15, %c0_16, %c0_17], %25 {strides = array<i32>} : memref<1x4x256xf32, #tpu.memory_space<vmem>>, vector<1x4x256xf32>,
    return
  }
  func.func @transform_0(%arg0: i32) -> (i32, i32, i32) {
    %c0_i32 = arith.constant 0 : i32
    %c0_i32_0 = arith.constant 0 : i32
    %c0_i32_1 = arith.constant 0 : i32
    return %arg0, %c0_i32, %c0_i32_0 : i32, i32, i32
  }
  func.func @transform_1(%arg0: i32) -> (i32, i32) {
    %c0_i32 = arith.constant 0 : i32
    %c0_i32_0 = arith.constant 0 : i32
    %c0_i32_1 = arith.constant 0 : i32
    return %c0_i32, %c0_i32_0 : i32, i32
  }
  func.func @transform_2(%arg0: i32) -> (i32, i32) {
    %c0_i32 = arith.constant 0 : i32
    %c0_i32_0 = arith.constant 0 : i32
    %c0_i32_1 = arith.constant 0 : i32
    return %c0_i32, %c0_i32_0 : i32, i32
  }
  func.func @transform_3(%arg0: i32) -> (i32, i32) {
    %c0_i32 = arith.constant 0 : i32
    %c0_i32_0 = arith.constant 0 : i32
    %c0_i32_1 = arith.constant 0 : i32
    return %c0_i32, %c0_i32_0 : i32, i32
  }
  func.func @transform_4(%arg0: i32) -> (i32, i32) {
    %c0_i32 = arith.constant 0 : i32
    %c0_i32_0 = arith.constant 0 : i32
    %c0_i32_1 = arith.constant 0 : i32
    return %c0_i32, %c0_i32_0 : i32, i32
  }
  func.func @transform_5(%arg0: i32) -> (i32, i32, i32) {
    %c0_i32 = arith.constant 0 : i32
    %c0_i32_0 = arith.constant 0 : i32
    %c0_i32_1 = arith.constant 0 : i32
    return %arg0, %c0_i32, %c0_i32_0 : i32, i32, i32
  }
}

</mosaic_0001>

<bundles_post_ra>
// kernel: channel_se_layer.1
= control target key start
LH: loop header
LB: loop body
LE: loop exit
PB: predicated region body
PF: predicated region fallthrough
CT: control target
= control target key end

     0   :  { %s563_s18 = smov 0   ;;  %s602_s0 = inlined_call_operand.vmem [shape: f32[2,4,256], index: 0, kind: input, shape index: {}]   ;;  %s603_s1 = inlined_call_operand.vmem [shape: f32[2,4], index: 1, kind: input, shape index: {}]   ;;  %s604_s2 = inlined_call_operand.vmem [shape: f32[2,1], index: 2, kind: input, shape index: {}]   ;;  %s605_s3 = inlined_call_operand.vmem [shape: f32[4,2], index: 3, kind: input, shape index: {}]   ;;  %s606_s4 = inlined_call_operand.vmem [shape: f32[4,1], index: 4, kind: input, shape index: {}]   ;;  %s607_s5 = inlined_call_operand.vmem [shape: f32[2,4,256], index: 5, kind: output, shape index: {}]  }
   0x1 LB: > { %s471_s19 = sadd.s32 4294967295, %s527_s18   ;;  %p475_p0 = scmp.ge.s32.totalorder %s527_s18, 1  ;;  %s527_s18 = sphi %s563_s18, %s15_s18  }
   0x2   : > { %p187_p1 = scmp.lt.s32.totalorder %s527_s18, 3 }
   0x4   : > { %p188_p2 = pnand %p475_p0, %p187_p1 }
   0x5   : > { %p215_p3 = scmp.lt.s32.totalorder (!%p188_p2), %s471_s19, 1 }
   0x6   : > { %191 = sbr.rel (%p188_p2) target bundleno = 715 (0x2cb), region = 40 }
   0xb   : > { %s609_s19 = smov (!%p215_p3, %s471_s19), 1  ;;  %vm229_vm0 = vcmask 1043456   ;;  %v529_v5 = vmov 0.0   ;;  %vm530_vm1 = vmmov 0   ;;  %v236_v8 = vld [vmem:[%s603_s1] sm:$0x3]  ;;  %v409_v26 = vlaneseq }
   0xc   : > { %s487_s20 = sshll.u32 %s609_s19, 3  ;;  %493 = vmatprep.subr.mxu0 %v529_v5  ;;  %498 = vmatprep.subr.mxu1 %v529_v5  ;;  %vm238_vm2 = vcmask 31744   ;;  %v237_v9 = vld [vmem:[%s604_s2] sm:$0x3]  ;;  %vm322_vm3 = vcmask 1041408   ;;  %vm318_vm4 = vcmask 15360  }
   0xd   : > { %s219_s23 = scalar_lea.vmem %s602_s0, %s487_s20  ;;  %495 = vmatprep.mubr.msk.f32.mxu0 %vm530_vm1, %v529_v5  ;;  %500 = vmatprep.mubr.msk.f32.mxu1 %vm530_vm1, %v529_v5  ;;  %v316_v14 = vld [vmem:[%s605_s3] sm:$0xf]  ;;  %v531_v15 = vmov 0   ;;  %v532_v24 = vmov 839922192   ;;  %v410_v28 = vshrl.u32 %v409_v26, 7  ;;  %s224_s9 = scalar_lea.vmem %s607_s5, %s487_s20 }
   0xe   : > { %v225_v0 = vld [vmem:[%s219_s23] sm:$0xff]  ;;  %515 = vset.pattern.permute.xlu0 %v531_v15  ;;  %v407_v25 = vunpack.c.l.s4 %v532_v24 }
   0xf   : > { %v227_v1 = vcombine.high %v225_v0, %v225_v0  ;;  %v230_v2 = vsel %vm229_vm0, %v225_v0, 0.0  ;;  %v317_v16 = vld [vmem:[%s606_s4] sm:$0xf] }
  0x10   : > { %v408_v27 = vunpack.c.0.s8 %v407_v25 }
  0x11   : > { %v231_v3 = vsel %vm229_vm0, %v227_v1, 0.0 }
  0x12   : > { %v232_v4 = vadd.f32 %v231_v3, %v230_v2  ;;  %v411_v29 = vsub.s32 %v408_v27, %v410_v28 }
  0x14   : > { %233 = vadd.xlane.f32.xlu0 %v232_v4 }
  0x9d   : > { %v234_v6 = vpop.xlane.xlu0 %233 }
  0x9e   : > { %v235_v7 = vmul.f32 0.00390625, %v234_v6 }
  0xa0   : > { %494 = vmatpush3.msk.msra.mxu0 %vm229_vm0, %v235_v7 }
  0xa1   : > { %496 = vmatmul.mubr.msk.f32.vlgmr.msra.gmra.mxu0 %vm238_vm2, %v236_v8 }
 0x161   : > { %v311_v10 = vpop.f32.mrf.mxu0 }
 0x162   : > { %v312_v11 = vadd.f32 %v311_v10, %v237_v9 }
 0x163   : > { %v497_v12 = vpop.f32.mrf.mxu0 }
 0x164   : > { %v315_v13 = vmax.f32 %v312_v11, 0.0 }
 0x166   : > { %499 = vmatpush3.msk.msra.mxu1 %vm322_vm3, %v315_v13 }
 0x167   : > { %501 = vmatmul.mubr.msk.f32.vlgmr.msra.gmra.mxu1 %vm318_vm4, %v316_v14 }
 0x227   : > { %v392_v17 = vpop.f32.mrf.mxu1 }
 0x228   : > { %v393_v18 = vadd.f32 %v392_v17, %v317_v16 }
 0x229   : > { %v502_v19 = vpop.f32.mrf.mxu1 }
 0x22a   : > { %v484_v20 = vmul.f32 -1.442695, %v393_v18 }
 0x22c   : > { %517 = vpow2.f32 %v484_v20 }
 0x239   : > { %v518_v21 = vpop.eup %517 }
 0x23a   : > { %v399_v22 = vadd.f32 1.0, %v518_v21 }
 0x23c   : > { %519 = vrcp.f32 %v399_v22 }
 0x249   : > { %v520_v23 = vpop.eup %519 }
 0x24a   : > { %404 = vperm.xlu0 %515, %v520_v23  }
 0x2c5   : > { %v405_v30 = vpop.permute.xlu0 %404 }
 0x2c6   : > { %v412_v31 = vrot.slane %v405_v30, %v411_v29 }
 0x2c8   : > { %v414_v32 = vmul.f32 %v412_v31, %v225_v0 }
 0x2ca   : > { %415 = vst [vmem:[%s224_s9] sm:$0xff] %v414_v32 }
 0x2cb PF: > { %s15_s18 = sadd.s32 1, %s527_s18  }
 0x2cc   : > { %p12_p4 = scmp.ge.s32.totalorder %s15_s18, 4  }
 0x2ce   :  { %14 = sbr.rel (!%p12_p4) target bundleno = 1 (0x1), region = 70 }

</bundles_post_ra>
